<compile_context>
chip_gen: v7x
topology: tpu7x:2x2x1
jax: 0.10.0
libtpu: 0.0.40
codegen_flags: <defaults>
</compile_context>

<pallas_src>
import functools

import jax
import jax.numpy as jnp
from jax import lax
from jax.experimental import pallas as pl
from jax.experimental.pallas import tpu as pltpu


def _ce_label_smooth_kernel(x_ref, t_ref, o_ref, acc_ref, *, n_total, c, tile_n,
                            inv_temp, label_smooth, smooth_over_cm1):
    # x_ref:   (TILE_N, C) logits (native dtype) in VMEM
    # t_ref:   (TILE_N, 1) int32 targets in VMEM
    # o_ref:   (1, 1) f32 final loss in SMEM
    # acc_ref: (2,)  f32 SMEM scratch: [sum_nll, sum_logprob_rowsums]
    pid = pl.program_id(0)

    @pl.when(pid == 0)
    def _init():
        acc_ref[0] = jnp.float32(0.0)
        acc_ref[1] = jnp.float32(0.0)

    # Cast + temperature scale inside the kernel (VPU work hidden under the DMA).
    x = x_ref[...].astype(jnp.float32)
    if inv_temp != 1.0:
        x = x * jnp.float32(inv_temp)
    t = t_ref[...]                                           # (TILE_N, 1) int32

    # Numerically stable per-row logsumexp -- divide-free, no prob temporary.
    m = jnp.max(x, axis=1, keepdims=True)                    # (TILE_N, 1)
    e = jnp.exp(x - m)
    lse = m + jnp.log(jnp.sum(e, axis=1, keepdims=True))     # (TILE_N, 1)

    # x[i, target_i] via lane-iota one-hot select (no gather on TPU).
    lane = lax.broadcasted_iota(jnp.int32, (tile_n, c), dimension=1)
    x_tgt = jnp.sum(jnp.where(lane == t, x, 0.0), axis=1, keepdims=True)

    nll = lse - x_tgt                                        # -log_prob[i, t_i]
    # sum_j log_prob[i, j] = sum_j x[i, j] - C * lse[i]
    logsum = jnp.sum(x, axis=1, keepdims=True) - jnp.float32(c) * lse

    # Mask padded tail rows so they contribute exactly 0.
    row = pid * tile_n + lax.broadcasted_iota(jnp.int32, (tile_n, 1), dimension=0)
    valid = row < n_total
    nll = jnp.where(valid, nll, 0.0)
    logsum = jnp.where(valid, logsum, 0.0)

    acc_ref[0] += jnp.sum(nll)
    acc_ref[1] += jnp.sum(logsum)

    @pl.when(pid == pl.num_programs(0) - 1)
    def _finalize():
        inv_n = jnp.float32(1.0 / n_total)                   # true N, not block size
        loss = acc_ref[0] * inv_n
        mean_logsum = acc_ref[1] * inv_n
        ls = jnp.float32(label_smooth)
        o_ref[0, 0] = (loss * (jnp.float32(1.0) - ls)
                       - (loss + mean_logsum) * jnp.float32(smooth_over_cm1))


def _choose_tile_n(n, c, itemsize, vmem_budget_bytes=24 * 1024 * 1024):
    """Largest row tile whose double-buffered logit tiles fit the VMEM budget."""
    per_row = 2 * c * itemsize                 # 2x for BlockSpec double-buffering
    tile = max(8, vmem_budget_bytes // max(per_row, 1))
    tile = min(tile, 1024)                     # diminishing returns past ~512-1024 rows
    tile = max(8, (tile // 8) * 8)             # sublane alignment
    if n <= tile:
        return n                               # block == full dim is always legal
    return tile


def cross_entropy_with_label_smooth(logits, target, *, label_smooth=0.1,
                                    temperature=1.0, tile_n=None):
    """logits: (N, C) float array (f32 or bf16); target: (N,) integer class ids."""
    n, c = logits.shape
    assert c > 1, "No need for classification if c == 1"

    if tile_n is None:
        tile_n = _choose_tile_n(n, c, jnp.dtype(logits.dtype).itemsize)
    tile_n = max(1, min(tile_n, n))
    grid = (pl.cdiv(n, tile_n),)

    t2d = target.astype(jnp.int32).reshape(n, 1)

    kernel = functools.partial(
        _ce_label_smooth_kernel,
        n_total=n, c=c, tile_n=tile_n,
        inv_temp=1.0 / float(temperature),
        label_smooth=float(label_smooth),
        smooth_over_cm1=float(label_smooth) / float(c - 1))

    out = pl.pallas_call(
        kernel,
        out_shape=jax.ShapeDtypeStruct((1, 1), jnp.float32),
        grid_spec=pltpu.PrefetchScalarGridSpec(
            num_scalar_prefetch=0,
            grid=grid,
            in_specs=[
                pl.BlockSpec((tile_n, c), lambda i: (i, 0)),   # logits tile (VMEM)
                pl.BlockSpec((tile_n, 1), lambda i: (i, 0)),   # targets tile (VMEM)
            ],
            out_specs=pl.BlockSpec((1, 1), lambda i: (0, 0),
                                   memory_space=pltpu.MemorySpace.SMEM),
            scratch_shapes=[pltpu.SMEM((2,), jnp.float32)],
        ),
        compiler_params=pltpu.CompilerParams(
            dimension_semantics=("arbitrary",),          # scalar accumulator axis
            vmem_limit_bytes=32 * 1024 * 1024,           # raises v5e's 16 MiB default
        ),
    )(logits, t2d)
    return out[0, 0]


def _reference(logits, target, label_smooth=0.1, temperature=1.0):
    x = logits.astype(jnp.float32) / jnp.float32(temperature)
    n, c = x.shape
    log_prob = jax.nn.log_softmax(x, axis=1)
    nll = -jnp.take_along_axis(log_prob, target.reshape(n, 1).astype(jnp.int32),
                               axis=1)[:, 0]
    loss = jnp.mean(nll)
    mean_logsum = jnp.mean(jnp.sum(log_prob, axis=1))
    return loss * (1.0 - label_smooth) - (loss + mean_logsum) * (label_smooth / (c - 1))


if __name__ == "__main__":
    key = jax.random.PRNGKey(0)
    k1, k2 = jax.random.split(key)
    # Small shapes: 20 samples x 32 classes. tile_n=8 -> grid of 3 row-tiles,
    # exercising pipelined accumulation AND ragged-tail masking (20 % 8 != 0).
    N, C = 20, 32
    logits = jax.random.normal(k1, (N, C), dtype=jnp.float32)
    target = jax.random.randint(k2, (N,), 0, C, dtype=jnp.int32)

    loss = cross_entropy_with_label_smooth(logits, target,
                                           label_smooth=0.1, temperature=1.0,
                                           tile_n=8)
    jax.block_until_ready(loss)

    ref = _reference(logits, target, label_smooth=0.1, temperature=1.0)
    assert jnp.allclose(loss, ref, rtol=1e-4, atol=1e-4), (loss, ref)
    print("KERNEL_OK")
</pallas_src>

<mosaic_0001>
module attributes {stable_mosaic.version = 11 : i64} {
  func.func @_ce_label_smooth_kernel(%arg0: i32, %arg1: memref<8x32xf32, #tpu.memory_space<vmem>>, %arg2: memref<8x1xi32, #tpu.memory_space<vmem>>, %arg3: memref<1x1xf32, #tpu.memory_space<smem>>, %arg4: memref<2xf32, #tpu.memory_space<smem>>) attributes {dimension_semantics = [#tpu.dimension_semantics<arbitrary>], iteration_bounds = array<i64: 3>, scalar_prefetch = 0 : i64, scratch_operands = 1 : i64, tpu.core_type = #tpu.core_type<tc>, window_params = [{transform_indices = @transform_0, window_bounds = array<i64: 8, 32>}, {transform_indices = @transform_1, window_bounds = array<i64: 8, 1>}, {transform_indices = @transform_2, window_bounds = array<i64: 1, 1>}]} {
    %c0_i32 = arith.constant 0 : i32
    %0 = arith.cmpi eq, %arg0, %c0_i32 : i32
    %1 = arith.extui %0 : i1 to i32
    %c0_i32_0 = arith.constant 0 : i32
    %2 = arith.cmpi ne, %1, %c0_i32_0 : i32
    scf.if %2 {
      %cst_17 = arith.constant 0.000000e+00 : f32
      %c0_18 = arith.constant 0 : index
      %54 = memref.load %arg4[%c0_18] : memref<2xf32, #tpu.memory_space<smem>>
      memref.store %cst_17, %arg4[%c0_18] : memref<2xf32, #tpu.memory_space<smem>>
      %cst_19 = arith.constant 0.000000e+00 : f32
      %c1_20 = arith.constant 1 : index
      %55 = memref.load %arg4[%c1_20] : memref<2xf32, #tpu.memory_space<smem>>
      memref.store %cst_19, %arg4[%c1_20] : memref<2xf32, #tpu.memory_space<smem>>
    } else {
    }
    %c0 = arith.constant 0 : index
    %c0_1 = arith.constant 0 : index
    %3 = vector.load %arg1[%c0, %c0_1] : memref<8x32xf32, #tpu.memory_space<vmem>>, vector<8x32xf32>
    %c0_2 = arith.constant 0 : index
    %c0_3 = arith.constant 0 : index
    %4 = vector.load %arg2[%c0_2, %c0_3] : memref<8x1xi32, #tpu.memory_space<vmem>>, vector<8x1xi32>
    %cst = arith.constant dense<0xFF800000> : vector<8xf32>
    %5 = vector.multi_reduction <maximumf>, %3, %cst [1] : vector<8x32xf32> to vector<8xf32>
    %6 = vector.shape_cast %5 : vector<8xf32> to vector<8x1xf32>
    %7 = vector.broadcast %6 : vector<8x1xf32> to vector<8x32xf32>
    %8 = arith.subf %3, %7 : vector<8x32xf32>
    %9 = math.exp %8 : vector<8x32xf32>
    %cst_4 = arith.constant dense<0.000000e+00> : vector<8xf32>
    %10 = vector.multi_reduction <add>, %9, %cst_4 [1] : vector<8x32xf32> to vector<8xf32>
    %11 = vector.shape_cast %10 : vector<8xf32> to vector<8x1xf32>
    %12 = math.log %11 : vector<8x1xf32>
    %13 = arith.addf %6, %12 : vector<8x1xf32>
    %14 = tpu.iota {dimensions = array<i32: 1>} : vector<8x32xi32>
    %15 = vector.broadcast %4 : vector<8x1xi32> to vector<8x32xi32>
    %16 = arith.cmpi eq, %14, %15 : vector<8x32xi32>
    %cst_5 = arith.constant 0.000000e+00 : f32
    %17 = vector.broadcast %cst_5 : f32 to vector<8x32xf32>
    %18 = arith.select %16, %3, %17 : vector<8x32xi1>, vector<8x32xf32>
    %cst_6 = arith.constant dense<0.000000e+00> : vector<8xf32>
    %19 = vector.multi_reduction <add>, %18, %cst_6 [1] : vector<8x32xf32> to vector<8xf32>
    %20 = vector.shape_cast %19 : vector<8xf32> to vector<8x1xf32>
    %21 = arith.subf %13, %20 : vector<8x1xf32>
    %cst_7 = arith.constant dense<0.000000e+00> : vector<8xf32>
    %22 = vector.multi_reduction <add>, %3, %cst_7 [1] : vector<8x32xf32> to vector<8xf32>
    %23 = vector.shape_cast %22 : vector<8xf32> to vector<8x1xf32>
    %cst_8 = arith.constant 3.200000e+01 : f32
    %24 = vector.broadcast %cst_8 : f32 to vector<8x1xf32>
    %25 = arith.mulf %24, %13 : vector<8x1xf32>
    %26 = arith.subf %23, %25 : vector<8x1xf32>
    %c8_i32 = arith.constant 8 : i32
    %27 = arith.muli %arg0, %c8_i32 : i32
    %28 = tpu.iota {dimensions = array<i32: 0>} : vector<8x1xi32>
    %29 = vector.broadcast %27 : i32 to vector<8x1xi32>
    %30 = arith.addi %29, %28 : vector<8x1xi32>
    %c20_i32 = arith.constant 20 : i32
    %31 = vector.broadcast %c20_i32 : i32 to vector<8x1xi32>
    %32 = arith.cmpi slt, %30, %31 : vector<8x1xi32>
    %cst_9 = arith.constant 0.000000e+00 : f32
    %33 = vector.broadcast %cst_9 : f32 to vector<8x1xf32>
    %34 = arith.select %32, %21, %33 : vector<8x1xi1>, vector<8x1xf32>
    %cst_10 = arith.constant 0.000000e+00 : f32
    %35 = vector.broadcast %cst_10 : f32 to vector<8x1xf32>
    %36 = arith.select %32, %26, %35 : vector<8x1xi1>, vector<8x1xf32>
    %c0_11 = arith.constant 0 : index
    %37 = memref.load %arg4[%c0_11] : memref<2xf32, #tpu.memory_space<smem>>
    %38 = vector.shape_cast %34 : vector<8x1xf32> to vector<1x8x1xf32>
    %cst_12 = arith.constant dense<0.000000e+00> : vector<1xf32>
    %39 = vector.multi_reduction <add>, %38, %cst_12 [1, 2] : vector<1x8x1xf32> to vector<1xf32>
    %40 = vector.shape_cast %39 : vector<1xf32> to vector<1x1x1xf32>
    %41 = vector.extract %40[0, 0, 0] : f32 from vector<1x1x1xf32>
    %42 = arith.addf %37, %41 : f32
    %c0_13 = arith.constant 0 : index
    %43 = memref.load %arg4[%c0_13] : memref<2xf32, #tpu.memory_space<smem>>
    memref.store %42, %arg4[%c0_13] : memref<2xf32, #tpu.memory_space<smem>>
    %c1 = arith.constant 1 : index
    %44 = memref.load %arg4[%c1] : memref<2xf32, #tpu.memory_space<smem>>
    %45 = vector.shape_cast %36 : vector<8x1xf32> to vector<1x8x1xf32>
    %cst_14 = arith.constant dense<0.000000e+00> : vector<1xf32>
    %46 = vector.multi_reduction <add>, %45, %cst_14 [1, 2] : vector<1x8x1xf32> to vector<1xf32>
    %47 = vector.shape_cast %46 : vector<1xf32> to vector<1x1x1xf32>
    %48 = vector.extract %47[0, 0, 0] : f32 from vector<1x1x1xf32>
    %49 = arith.addf %44, %48 : f32
    %c1_15 = arith.constant 1 : index
    %50 = memref.load %arg4[%c1_15] : memref<2xf32, #tpu.memory_space<smem>>
    memref.store %49, %arg4[%c1_15] : memref<2xf32, #tpu.memory_space<smem>>
    %c2_i32 = arith.constant 2 : i32
    %51 = arith.cmpi eq, %arg0, %c2_i32 : i32
    %52 = arith.extui %51 : i1 to i32
    %c0_i32_16 = arith.constant 0 : i32
    %53 = arith.cmpi ne, %52, %c0_i32_16 : i32
    scf.if %53 {
      %c0_17 = arith.constant 0 : index
      %54 = memref.load %arg4[%c0_17] : memref<2xf32, #tpu.memory_space<smem>>
      %cst_18 = arith.constant 5.000000e-02 : f32
      %55 = arith.mulf %54, %cst_18 : f32
      %c1_19 = arith.constant 1 : index
      %56 = memref.load %arg4[%c1_19] : memref<2xf32, #tpu.memory_space<smem>>
      %cst_20 = arith.constant 5.000000e-02 : f32
      %57 = arith.mulf %56, %cst_20 : f32
      %cst_21 = arith.constant 1.000000e+00 : f32
      %cst_22 = arith.constant 1.000000e-01 : f32
      %58 = arith.subf %cst_21, %cst_22 : f32
      %59 = arith.mulf %55, %58 : f32
      %60 = arith.addf %55, %57 : f32
      %cst_23 = arith.constant 0.0032258064 : f32
      %61 = arith.mulf %60, %cst_23 : f32
      %62 = arith.subf %59, %61 : f32
      %c0_24 = arith.constant 0 : index
      %c0_25 = arith.constant 0 : index
      %63 = memref.load %arg3[%c0_24, %c0_25] : memref<1x1xf32, #tpu.memory_space<smem>>
      memref.store %62, %arg3[%c0_24, %c0_25] : memref<1x1xf32, #tpu.memory_space<smem>>
    } else {
    }
    return
  }
  func.func @transform_0(%arg0: i32) -> (i32, i32) {
    %c0_i32 = arith.constant 0 : i32
    %c0_i32_0 = arith.constant 0 : i32
    return %arg0, %c0_i32 : i32, i32
  }
  func.func @transform_1(%arg0: i32) -> (i32, i32) {
    %c0_i32 = arith.constant 0 : i32
    %c0_i32_0 = arith.constant 0 : i32
    return %arg0, %c0_i32 : i32, i32
  }
  func.func @transform_2(%arg0: i32) -> (i32, i32) {
    %c0_i32 = arith.constant 0 : i32
    %c0_i32_0 = arith.constant 0 : i32
    %c0_i32_1 = arith.constant 0 : i32
    return %c0_i32, %c0_i32_0 : i32, i32
  }
}

</mosaic_0001>

<bundles_post_ra>
// kernel: tpu_custom_call.1
= control target key start
LH: loop header
LB: loop body
LE: loop exit
PB: predicated region body
PF: predicated region fallthrough
CT: control target
= control target key end

     0   :  { %7 = vsyncpa [#allocation4], 0  ;;  %s381_s9 = smov 0   ;;  %s431_s0 = inlined_call_operand.vmem [shape: f32[20,32], index: 0, kind: input, shape index: {}]   ;;  %s432_s1 = inlined_call_operand.vmem [shape: s32[20,1], index: 1, kind: input, shape index: {}]   ;;  %s433_s2 = inlined_call_operand.hbm [shape: f32[1,1], index: 2, kind: output, shape index: {}]  }
   0x1 LB: > { %s387_s10 = sadd.s32 4294967295, %s361_s9   ;;  %p294_p0 = scmp.ge.s32.totalorder %s361_s9, 1  ;;  %s361_s9 = sphi %s381_s9, %s13_s9  }
   0x2   : > { %p116_p1 = scmp.lt.s32.totalorder %s361_s9, 4 }
   0x4   : > { %p117_p2 = pnand %p294_p0, %p116_p1 }
   0x5   : > { %p136_p3 = scmp.lt.s32.totalorder (!%p117_p2), %s387_s10, 2  ;;  %v363_v0 = vmov (!%p117_p2), 0   ;;  %vm154_vm0 = vcmask (!%p117_p2), 261120   ;;  %v167_v7 = vlaneseq (!%p117_p2)  ;;  %s298_s19 = sshll.u32 (!%p117_p2), %s387_s10, 3  ;;  %vm192_vm3 = vcmask (!%p117_p2), 7168  }
   0x6   : > { %120 = sbr.rel (%p117_p2) target bundleno = 563 (0x233), region = 28  ;;  %334 = vset.pattern.permute.xlu0 (!%p117_p2), %v363_v0  ;;  %v186_v17 = vstv (!%p117_p2), %s298_s19  ;;  %p319_p4 = scmp.eq.s32.totalorder (!%p117_p2), %s387_s10, 0 }
   0x7   : > { %v168_v8 = vand.u32 (!%p117_p2), 127, %v167_v7  ;;  %v185_v16 = vshrl.u32 (!%p117_p2), %v167_v7, 7  ;;  %s364_s20 = smov (!%p117_p2), 0.0   ;;  %p320_p5 = scmp.eq.s32.totalorder (!%p117_p2), %s387_s10, 2 }
   0x8   : > { %s339_s7 = scalar_lea.hbm (!%p117_p2), %s433_s2, 16 }
   0x9   : > { %v187_v20 = vadd.s32 (!%p117_p2), %v186_v17, %v185_v16  ;;  %p340_p6 = scmp.ne.s32.totalorder (!%p117_p2), %s433_s2, %s339_s7  ;;  %p345_p9 = scmp.lt.u32.totalorder (!%p117_p2), %s339_s7, %s433_s2 }
   0xb   : > { %vm188_vm2 = vcmp.lt.s32.totalorder (!%p117_p2), %v187_v20, 20  ;;  %p341_p7 = pnand (!%p117_p2), %p340_p6, %p320_p5 }
   0xd   : > { %s137_s11 = scalar_select %p136_p3, %s387_s10, 2 }
   0xe   : > { %311 = sst [smem:[#allocation2]] (%p319_p4), %s364_s20  ;;  %p342_p8 = pneg %p341_p7 }
   0xf   : > { %s295_s12 = sshll.u32 %s137_s11, 3  ;;  %312 = sst [smem:[#allocation2 + $0x1]] (%p319_p4), %s364_s20 }
  0x10   : > { %s139_s15 = scalar_lea.vmem %s431_s0, %s295_s12  ;;  %s143_s18 = scalar_lea.vmem %s432_s1, %s295_s12 }
  0x11   : > { %v152_v1 = vld [vmem:[%s139_s15] sm:$0xff]  ;;  %s191_s21 = sld [smem:[#allocation2]]  ;;  %s299_s22 = sld [smem:[#allocation2 + $0x1]] }
  0x12   : > { %v155_v2 = vsel %vm154_vm0, %v152_v1, -inf  ;;  %v153_v3 = vld [vmem:[%s143_s18] sm:$0xff]  ;;  %v178_v14 = vsel %vm154_vm0, %v152_v1, 0.0  ;;  %p347_p10 = pnand %p345_p9, %p342_p8 }
  0x13   : > { %156 = vmax.xlane.f32.xlu0 %v155_v2 }
  0x29   : > { %170 = vperm.xlu0 %334, %v153_v3  }
  0xa0   : > { %v157_v4 = vpop.xlane.xlu0 %156 }
  0xa1   : > { %v158_v5 = vsub.f32 %v152_v1, %v157_v4 }
  0xa3   : > { %v159_v6 = vmul.f32 1.442695, %v158_v5 }
  0xa5   : > { %335 = vpow2.f32 %v159_v6 }
  0xa8   : > { %v171_v9 = vpop.permute.xlu0 %170 }
  0xa9   : > { %vm172_vm1 = vcmp.eq.s32.totalorder %v168_v8, %v171_v9 }
  0xaa   : > { %v173_v11 = vsel %vm172_vm1, %v152_v1, 0.0 }
  0xab   : > { %v174_v13 = vsel %vm154_vm0, %v173_v11, 0.0 }
  0xaf   : > { %v336_v10 = vpop.eup %335 }
  0xb0   : > { %v161_v12 = vsel %vm154_vm0, %v336_v10, 0.0 }
  0xb1   : > { %162 = vadd.xlane.f32.xlu1 %v161_v12 }
  0xb5   : > { %175 = vadd.xlane.f32.xlu1 %v174_v13 }
  0xb9   : > { %179 = vadd.xlane.f32.xlu1 %v178_v14 }
 0x13e   : > { %v163_v15 = vpop.xlane.xlu1 %162 }
 0x13f   : > { %337 = vlog2.f32 %v163_v15 }
 0x142   : > { %v176_v18 = vpop.xlane.xlu1 %175 }
 0x146   : > { %v180_v23 = vpop.xlane.xlu1 %179 }
 0x149   : > { %v338_v19 = vpop.eup %337 }
 0x14a   : > { %v165_v21 = vmul.f32 0.6931472, %v338_v19 }
 0x14c   : > { %v166_v22 = vadd.f32 %v165_v21, %v157_v4 }
 0x14e   : > { %v177_v24 = vsub.f32 %v166_v22, %v176_v18  ;;  %v181_v25 = vmul.f32 32.0, %v166_v22 }
 0x150   : > { %v182_v26 = vsub.f32 %v180_v23, %v181_v25  ;;  %v189_v27 = vsel %vm188_vm2, %v177_v24, 0.0 }
 0x151   : > { %v193_v28 = vsel %vm192_vm3, %v189_v27, 0.0 }
 0x152   : > { %194 = vadd.xlane.f32.xlu1 %v193_v28  ;;  %v190_v29 = vsel %vm188_vm2, %v182_v26, 0.0 }
 0x153   : > { %v207_v30 = vsel %vm192_vm3, %v190_v29, 0.0 }
 0x156   : > { %208 = vadd.xlane.f32.xlu1 %v207_v30 }
 0x1df   : > { %v195_v31 = vpop.xlane.xlu1 %194 }
 0x1e0   : > { %v196_v32 = vrot.slane %v195_v31, 4 }
 0x1e2   : > { %v197_v33 = vadd.f32 %v196_v32, %v195_v31 }
 0x1e3   : > { %v209_v34 = vpop.xlane.xlu1 %208 }
 0x1e4   : > { %v198_v35 = vrot.slane %v197_v33, 2  ;;  %v210_v36 = vrot.slane %v209_v34, 4 }
 0x1e6   : > { %v211_v37 = vadd.f32 %v210_v36, %v209_v34  ;;  %v199_v38 = vadd.f32 %v198_v35, %v197_v33 }
 0x1e8   : > { %v212_v39 = vrot.slane %v211_v37, 2  ;;  %v200_v40 = vrot.slane %v199_v38, 1 }
 0x1ea   : > { %v213_v41 = vadd.f32 %v212_v39, %v211_v37  ;;  %v201_v42 = vadd.f32 %v200_v40, %v199_v38 }
 0x1ec   : > { %306 = vpush %v201_v42  ;;  %v214_v43 = vrot.slane %v213_v41, 1 }
 0x1ee   : > { %v215_v44 = vadd.f32 %v214_v43, %v213_v41 }
 0x1f0   : > { %308 = vpush %v215_v44 }
 0x21d   : > { %s307_s23 = spop %306 }
 0x21e   : > { %s203_s24 = sadd.f32 %s307_s23, %s191_s21 }
 0x220   : > { %205 = sst [smem:[#allocation2]] %s203_s24  ;;  %s225_s27 = smul.f32 0.05, %s203_s24 }
 0x221   : > { %s309_s25 = spop %308 }
 0x222   : > { %s217_s26 = sadd.f32 %s309_s25, %s299_s22  ;;  %s228_s30 = smul.f32 0.9, %s225_s27 }
 0x224   : > { %219 = sst [smem:[#allocation2 + $0x1]] %s217_s26  ;;  %s227_s28 = smul.f32 0.05, %s217_s26 }
 0x226   : > { %s229_s29 = sadd.f32 %s227_s28, %s225_s27 }
 0x228   : > { %s230_s3 = smul.f32 0.0032258064, %s229_s29 }
 0x22a   : > { %s231_s4 = ssub.f32 %s228_s30, %s230_s3 }
 0x22c   : > { %314 = sst [smem:[#allocation3]] (%p320_p5), %s231_s4 }
 0x22d   : > { %350 = shalt.err (!%p347_p10)
}
 0x22e   : > { %s365_s14 = smov [#allocation3]  }
 0x22f   : > { %316 = dma.smem_to_hbm (%p320_p5), %s365_s14, 16, %s433_s2, [#allocation4]  }
 0x230   : > { %356 = dma.done.wait (%p320_p5), [#allocation4], 16  }
 0x231   : > { %358 = vsyncadd (%p320_p5), [#allocation4], 4294967280 }
 0x232   : > { %247 = sfence }
 0x233 PF: > { %s13_s9 = sadd.s32 1, %s361_s9  }
 0x234   : > { %p10_p11 = scmp.ge.s32.totalorder %s13_s9, 5  }
 0x236   :  { %12 = sbr.rel (!%p10_p11) target bundleno = 1 (0x1), region = 71 }
 0x23d   :  { %253 = vsyncpa [#allocation4], 1 }
 0x23e   :  { %255 = vsyncpa [#allocation4 + $0x1], 1 }

</bundles_post_ra>
